<compile_context>
chip_gen: v5e
topology: v5e:2x2
jax: 0.10.0
libtpu: 0.0.40
codegen_flags: <defaults>
</compile_context>

<pallas_src>
import jax
import jax.numpy as jnp
from jax import lax
from jax.experimental import pallas as pl
from jax.experimental.pallas import tpu as pltpu


def _round_up(n, m):
    return ((n + m - 1) // m) * m


# ----------------------------------------------------------------------------
# Shared in-kernel math helpers (traced inside the kernel bodies)
# ----------------------------------------------------------------------------
def _mlp_math(x, w1, b1, w2, b2, w3, b3):
    """3-layer MLP forward.  b3 may be a scalar or a (1, O) array."""
    h1 = jnp.maximum(jnp.dot(x, w1, preferred_element_type=jnp.float32) + b1, 0.0)
    h2 = jnp.maximum(jnp.dot(h1, w2, preferred_element_type=jnp.float32) + b2, 0.0)
    return jnp.dot(h2, w3, preferred_element_type=jnp.float32) + b3


def _adapt_math(lr, x, y, w1, b1, w2, b2, w3, b3):
    """Forward + analytic MSE backward + first-order MAML SGD update."""
    # ---- forward ----
    z1 = jnp.dot(x, w1, preferred_element_type=jnp.float32) + b1      # (B, H)
    h1 = jnp.maximum(z1, 0.0)
    z2 = jnp.dot(h1, w2, preferred_element_type=jnp.float32) + b2     # (B, H)
    h2 = jnp.maximum(z2, 0.0)
    pred = jnp.dot(h2, w3, preferred_element_type=jnp.float32) + b3   # (B, O)

    # ---- backward of loss = mean((pred - y)^2) (first-order MAML) ----
    n = pred.shape[0] * pred.shape[1]
    dpred = (2.0 / n) * (pred - y)                                    # (B, O)

    # dW = act^T @ dOut (contract over batch), dIn = dOut @ W^T
    dw3 = lax.dot_general(h2, dpred, (((0,), (0,)), ((), ())),
                          preferred_element_type=jnp.float32)          # (H, O)
    db3 = jnp.sum(dpred, axis=0, keepdims=True)                        # (1, O)
    dh2 = lax.dot_general(dpred, w3, (((1,), (1,)), ((), ())),
                          preferred_element_type=jnp.float32)          # (B, H)
    dz2 = jnp.where(z2 > 0.0, dh2, 0.0)
    dw2 = lax.dot_general(h1, dz2, (((0,), (0,)), ((), ())),
                          preferred_element_type=jnp.float32)          # (H, H)
    db2 = jnp.sum(dz2, axis=0, keepdims=True)
    dh1 = lax.dot_general(dz2, w2, (((1,), (1,)), ((), ())),
                          preferred_element_type=jnp.float32)          # (B, H)
    dz1 = jnp.where(z1 > 0.0, dh1, 0.0)
    dw1 = lax.dot_general(x, dz1, (((0,), (0,)), ((), ())),
                          preferred_element_type=jnp.float32)          # (F, H)
    db1 = jnp.sum(dz1, axis=0, keepdims=True)

    # ---- maml_update: p <- p + (-lr * g) ----
    return (w1 - lr * dw1, b1 - lr * db1,
            w2 - lr * dw2, b2 - lr * db2,
            w3 - lr * dw3, b3 - lr * db3)


# ----------------------------------------------------------------------------
# Kernel 1: fused MLP forward (MAML.forward -> module.forward), row-tiled
# ----------------------------------------------------------------------------
def _mlp_fwd_kernel(x_ref, w1_ref, b1_ref, w2_ref, b2_ref, w3_ref, b3_ref, o_ref):
    # TODO(synk): with out_dim=1 the final store is a 1-lane masked store; at
    # production batch sizes emit the output lane-dense (padded head) instead.
    o_ref[...] = _mlp_math(
        x_ref[...], w1_ref[...], b1_ref[...], w2_ref[...], b2_ref[...],
        w3_ref[...], b3_ref[0, 0]).astype(o_ref.dtype)


def maml_forward(x, params, *, row_tile=128):
    """MAML.forward(x) == wrapped MLP forward, fused into a single Pallas call.

    x: (M, F) with any meta-batch of tasks folded into M (= tasks * batch).
    Rows are tiled over a 1-D grid so large meta-batches pipeline through VMEM
    while the weights stay resident.
    """
    w1, b1, w2, b2, w3, b3 = params
    assert b3.shape == (1, 1)  # regressor head is out_dim=1; b3 lives in SMEM
    m, f = x.shape
    out_dim = w3.shape[1]

    tm = min(row_tile, _round_up(m, 8))
    mp = _round_up(m, tm)
    if mp != m:
        x = jnp.pad(x, ((0, mp - m), (0, 0)))

    def shared(arr):
        return pl.BlockSpec(arr.shape, lambda i: (0, 0))

    out = pl.pallas_call(
        _mlp_fwd_kernel,
        out_shape=jax.ShapeDtypeStruct((mp, out_dim), jnp.float32),
        grid_spec=pltpu.PrefetchScalarGridSpec(
            num_scalar_prefetch=0,
            grid=(mp // tm,),
            in_specs=[pl.BlockSpec((tm, f), lambda i: (i, 0)),   # x row tile
                      shared(w1), shared(b1),
                      shared(w2), shared(b2),
                      shared(w3),
                      pl.BlockSpec(memory_space=pltpu.MemorySpace.SMEM)],  # b3
            out_specs=pl.BlockSpec((tm, out_dim), lambda i: (i, 0)),
        ),
        compiler_params=pltpu.CompilerParams(
            dimension_semantics=("parallel",)),
    )(x, w1, b1, w2, b2, w3, b3)
    return out[:m]


# ----------------------------------------------------------------------------
# Kernel 2: fully fused MAML.adapt  (forward + analytic backward + SGD update)
# One grid step per task; lr is a runtime SMEM scalar.
# ----------------------------------------------------------------------------
def _fused_adapt_kernel(lr_ref, x_ref, y_ref,
                        w1_ref, b1_ref, w2_ref, b2_ref, w3_ref, b3_ref,
                        w1o_ref, b1o_ref, w2o_ref, b2o_ref, w3o_ref, b3o_ref):
    nw1, nb1, nw2, nb2, nw3, nb3 = _adapt_math(
        lr_ref[0, 0], x_ref[0], y_ref[0],
        w1_ref[...], b1_ref[...], w2_ref[...], b2_ref[...],
        w3_ref[...], b3_ref[...])
    w1o_ref[0] = nw1
    b1o_ref[0] = nb1
    w2o_ref[0] = nw2
    b2o_ref[0] = nb2
    w3o_ref[0] = nw3
    b3o_ref[0] = nb3


def _shared_spec(arr):
    """Shared (meta) parameter: same 2-D block every grid step."""
    return pl.BlockSpec(arr.shape, lambda t: (0, 0))


def _per_task_spec(shape2d):
    """(T, *, *) array: one task slice per grid step."""
    return pl.BlockSpec((1,) + tuple(shape2d), lambda t: (t, 0, 0))


def maml_adapt_batched(params, x, y, lr):
    """One first-order MAML adaptation step for a whole meta-batch of tasks.

    x: (T, B, F)  support inputs per task
    y: (T, B, O)  support targets per task
    Returns per-task adapted params, each stacked over a leading T axis.
    The original (meta) params are untouched, mirroring MAML.clone() + adapt().
    """
    # TODO(synk): second-order MAML (create_graph=True) would need a
    # differentiable Pallas kernel (custom_vjp); first-order update implemented.
    w1, b1, w2, b2, w3, b3 = params
    t = x.shape[0]
    lr_arr = jnp.asarray(lr, jnp.float32).reshape(1, 1)

    smem = pl.BlockSpec(memory_space=pltpu.MemorySpace.SMEM)
    out_shapes = tuple(jax.ShapeDtypeStruct((t,) + p.shape, p.dtype) for p in params)
    out_specs = [_per_task_spec(p.shape) for p in params]

    grid_spec = pltpu.PrefetchScalarGridSpec(
        num_scalar_prefetch=0,
        grid=(t,),
        in_specs=[smem,                              # lr (runtime scalar)
                  _per_task_spec(x.shape[1:]),       # x
                  _per_task_spec(y.shape[1:]),       # y
                  _shared_spec(w1), _shared_spec(b1),
                  _shared_spec(w2), _shared_spec(b2),
                  _shared_spec(w3), _shared_spec(b3)],
        out_specs=out_specs,
    )
    return pl.pallas_call(
        _fused_adapt_kernel,
        out_shape=out_shapes,
        grid_spec=grid_spec,
        compiler_params=pltpu.CompilerParams(
            dimension_semantics=("parallel",)),      # v7x: split tasks across TCs
    )(lr_arr, x, y, w1, b1, w2, b2, w3, b3)


def maml_adapt(params, x, y, lr):
    """Single-task convenience wrapper around the batched fused adapt kernel."""
    adapted = maml_adapt_batched(params, x[None], y[None], lr)
    return tuple(p[0] for p in adapted)


# ----------------------------------------------------------------------------
# Kernel 3: fused adapt-on-support + forward-on-query (meta-training step).
# The per-task adapted parameters never leave VMEM.
# ----------------------------------------------------------------------------
def _fused_adapt_query_kernel(lr_ref, xs_ref, ys_ref, xq_ref,
                              w1_ref, b1_ref, w2_ref, b2_ref, w3_ref, b3_ref,
                              q_ref):
    nw1, nb1, nw2, nb2, nw3, nb3 = _adapt_math(
        lr_ref[0, 0], xs_ref[0], ys_ref[0],
        w1_ref[...], b1_ref[...], w2_ref[...], b2_ref[...],
        w3_ref[...], b3_ref[...])
    q_ref[0] = _mlp_math(xq_ref[0], nw1, nb1, nw2, nb2, nw3, nb3).astype(q_ref.dtype)


def maml_adapt_and_eval(params, x_support, y_support, x_query, lr):
    """clone() + adapt(support) + forward(query) per task, fused in one kernel.

    x_support: (T, B, F), y_support: (T, B, O), x_query: (T, Q, F)
    Returns query predictions (T, Q, O).
    """
    w1, b1, w2, b2, w3, b3 = params
    t, q, _ = x_query.shape
    out_dim = w3.shape[1]
    lr_arr = jnp.asarray(lr, jnp.float32).reshape(1, 1)

    smem = pl.BlockSpec(memory_space=pltpu.MemorySpace.SMEM)
    grid_spec = pltpu.PrefetchScalarGridSpec(
        num_scalar_prefetch=0,
        grid=(t,),
        in_specs=[smem,                                    # lr
                  _per_task_spec(x_support.shape[1:]),     # x_support
                  _per_task_spec(y_support.shape[1:]),     # y_support
                  _per_task_spec(x_query.shape[1:]),       # x_query
                  _shared_spec(w1), _shared_spec(b1),
                  _shared_spec(w2), _shared_spec(b2),
                  _shared_spec(w3), _shared_spec(b3)],
        out_specs=_per_task_spec((q, out_dim)),
    )
    return pl.pallas_call(
        _fused_adapt_query_kernel,
        out_shape=jax.ShapeDtypeStruct((t, q, out_dim), jnp.float32),
        grid_spec=grid_spec,
        compiler_params=pltpu.CompilerParams(
            dimension_semantics=("parallel",)),
    )(lr_arr, x_support, y_support, x_query, w1, b1, w2, b2, w3, b3)


# ----------------------------------------------------------------------------
# Pure-JAX references (for correctness checks only)
# ----------------------------------------------------------------------------
def _ref_forward(params, x):
    w1, b1, w2, b2, w3, b3 = params
    h1 = jnp.maximum(x @ w1 + b1, 0.0)
    h2 = jnp.maximum(h1 @ w2 + b2, 0.0)
    return h2 @ w3 + b3


def _ref_adapt(params, x, y, lr):
    def loss_fn(p):
        pred = _ref_forward(p, x)
        return jnp.mean((pred - y) ** 2)
    grads = jax.grad(loss_fn)(params)
    return tuple(p - lr * g for p, g in zip(params, grads))


# ----------------------------------------------------------------------------
# Deterministic parameter construction (shapes implied by the wrapped MLP)
# ----------------------------------------------------------------------------
def init_params(key, in_features, hidden, out_features):
    k1, k2, k3 = jax.random.split(key, 3)
    s1 = 1.0 / jnp.sqrt(in_features)
    s2 = 1.0 / jnp.sqrt(hidden)
    w1 = jax.random.uniform(k1, (in_features, hidden), jnp.float32, -s1, s1)
    b1 = jnp.zeros((1, hidden), jnp.float32)
    w2 = jax.random.uniform(k2, (hidden, hidden), jnp.float32, -s2, s2)
    b2 = jnp.zeros((1, hidden), jnp.float32)
    w3 = jax.random.uniform(k3, (hidden, out_features), jnp.float32, -s2, s2)
    b3 = jnp.zeros((1, out_features), jnp.float32)
    # TODO(synk): at production scale store weights/activations in bf16 (f32 acc
    # kept via preferred_element_type) to halve DMA bytes on v6e/v7x.
    return (w1, b1, w2, b2, w3, b3)


if __name__ == "__main__":
    key = jax.random.PRNGKey(0)
    kx, ky, kq, kb, kp = jax.random.split(key, 5)

    tasks, batch, query, features, hidden, out_dim = 4, 8, 16, 32, 64, 1
    lr = 0.01  # MAML inner-loop learning rate (runtime scalar, not baked in)

    x = jax.random.normal(kx, (tasks, batch, features), jnp.float32)
    y = jax.random.normal(ky, (tasks, batch, out_dim), jnp.float32)
    xq = jax.random.normal(kq, (tasks, query, features), jnp.float32)
    params = init_params(kp, features, hidden, out_dim)

    # --- MAML.forward: meta-batch folded into M, one fused Pallas kernel. ---
    x2d = x.reshape(tasks * batch, features)
    pred = maml_forward(x2d, params)
    jax.block_until_ready(pred)
    assert jnp.allclose(pred, _ref_forward(params, x2d), atol=1e-5, rtol=1e-5)

    # --- Forward with a larger, non-tile-aligned batch (grid + padding path) ---
    xbig = jax.random.normal(kb, (300, features), jnp.float32)
    pred_big = maml_forward(xbig, params)
    jax.block_until_ready(pred_big)
    assert pred_big.shape == (300, out_dim)
    assert jnp.allclose(pred_big, _ref_forward(params, xbig), atol=1e-5, rtol=1e-5)

    # --- MAML.adapt: the whole meta-batch adapted in ONE pallas_call. ---
    adapted = maml_adapt_batched(params, x, y, lr)
    jax.block_until_ready(adapted)
    for ti in range(tasks):
        ref_p = _ref_adapt(params, x[ti], y[ti], lr)
        for a, r in zip(adapted, ref_p):
            assert jnp.allclose(a[ti], r, atol=1e-4, rtol=1e-4)

    # --- Forward with one task's adapted params (post-adaptation prediction). ---
    task0 = tuple(a[0] for a in adapted)
    pred0 = maml_forward(x[0], task0)
    jax.block_until_ready(pred0)
    assert jnp.allclose(pred0, _ref_forward(task0, x[0]), atol=1e-5, rtol=1e-5)

    # --- Fused adapt(support) + forward(query): adapted params stay in VMEM. ---
    qpred = maml_adapt_and_eval(params, x, y, xq, lr)
    jax.block_until_ready(qpred)
    for ti in range(tasks):
        ref_p = _ref_adapt(params, x[ti], y[ti], lr)
        assert jnp.allclose(qpred[ti], _ref_forward(ref_p, xq[ti]),
                            atol=1e-4, rtol=1e-4)

    print("KERNEL_OK")
</pallas_src>

<mosaic_0001>
module attributes {stable_mosaic.version = 11 : i64} {
  func.func @_mlp_fwd_kernel(%arg0: i32, %arg1: memref<32x32xf32, #tpu.memory_space<vmem>>, %arg2: memref<32x64xf32, #tpu.memory_space<vmem>>, %arg3: memref<1x64xf32, #tpu.memory_space<vmem>>, %arg4: memref<64x64xf32, #tpu.memory_space<vmem>>, %arg5: memref<1x64xf32, #tpu.memory_space<vmem>>, %arg6: memref<64x1xf32, #tpu.memory_space<vmem>>, %arg7: memref<1x1xf32, #tpu.memory_space<smem>>, %arg8: memref<32x1xf32, #tpu.memory_space<vmem>>) attributes {dimension_semantics = [#tpu.dimension_semantics<parallel>], iteration_bounds = array<i64: 1>, scalar_prefetch = 0 : i64, scratch_operands = 0 : i64, tpu.core_type = #tpu.core_type<tc>, window_params = [{transform_indices = @transform_0, window_bounds = array<i64: 32, 32>}, {pipeline_mode = #tpu.pipeline_mode<synchronous>, transform_indices = @transform_1, window_bounds = array<i64: 32, 64>}, {pipeline_mode = #tpu.pipeline_mode<synchronous>, transform_indices = @transform_2, window_bounds = array<i64: 1, 64>}, {pipeline_mode = #tpu.pipeline_mode<synchronous>, transform_indices = @transform_3, window_bounds = array<i64: 64, 64>}, {pipeline_mode = #tpu.pipeline_mode<synchronous>, transform_indices = @transform_4, window_bounds = array<i64: 1, 64>}, {pipeline_mode = #tpu.pipeline_mode<synchronous>, transform_indices = @transform_5, window_bounds = array<i64: 64, 1>}, {transform_indices = @transform_6, window_bounds = array<i64: 1, 1>}, {transform_indices = @transform_7, window_bounds = array<i64: 32, 1>}]} {
    %c0 = arith.constant 0 : index
    %c0_0 = arith.constant 0 : index
    %0 = vector.load %arg1[%c0, %c0_0] : memref<32x32xf32, #tpu.memory_space<vmem>>, vector<32x32xf32>
    %c0_1 = arith.constant 0 : index
    %c0_2 = arith.constant 0 : index
    %1 = vector.load %arg2[%c0_1, %c0_2] : memref<32x64xf32, #tpu.memory_space<vmem>>, vector<32x64xf32>
    %c0_3 = arith.constant 0 : index
    %c0_4 = arith.constant 0 : index
    %2 = vector.load %arg3[%c0_3, %c0_4] : memref<1x64xf32, #tpu.memory_space<vmem>>, vector<1x64xf32>
    %c0_5 = arith.constant 0 : index
    %c0_6 = arith.constant 0 : index
    %3 = vector.load %arg4[%c0_5, %c0_6] : memref<64x64xf32, #tpu.memory_space<vmem>>, vector<64x64xf32>
    %c0_7 = arith.constant 0 : index
    %c0_8 = arith.constant 0 : index
    %4 = vector.load %arg5[%c0_7, %c0_8] : memref<1x64xf32, #tpu.memory_space<vmem>>, vector<1x64xf32>
    %c0_9 = arith.constant 0 : index
    %c0_10 = arith.constant 0 : index
    %5 = vector.load %arg6[%c0_9, %c0_10] : memref<64x1xf32, #tpu.memory_space<vmem>>, vector<64x1xf32>
    %c0_11 = arith.constant 0 : index
    %c0_12 = arith.constant 0 : index
    %6 = memref.load %arg7[%c0_11, %c0_12] : memref<1x1xf32, #tpu.memory_space<smem>>
    %cst = arith.constant dense<0.000000e+00> : vector<32x64xf32>
    %7 = tpu.matmul %0, %1, %cst {dimension_numbers = #tpu.dot_dimension_numbers<[1], [0], [0], [1], [0, 0, 1, 1], [], []>} : vector<32x32xf32>, vector<32x64xf32>, vector<32x64xf32> -> vector<32x64xf32>
    %8 = vector.broadcast %2 : vector<1x64xf32> to vector<32x64xf32>
    %9 = arith.addf %7, %8 : vector<32x64xf32>
    %cst_13 = arith.constant 0.000000e+00 : f32
    %10 = vector.broadcast %cst_13 : f32 to vector<32x64xf32>
    %11 = arith.maximumf %9, %10 : vector<32x64xf32>
    %cst_14 = arith.constant dense<0.000000e+00> : vector<32x64xf32>
    %12 = tpu.matmul %11, %3, %cst_14 {dimension_numbers = #tpu.dot_dimension_numbers<[1], [0], [0], [1], [0, 0, 1, 1], [], []>} : vector<32x64xf32>, vector<64x64xf32>, vector<32x64xf32> -> vector<32x64xf32>
    %13 = vector.broadcast %4 : vector<1x64xf32> to vector<32x64xf32>
    %14 = arith.addf %12, %13 : vector<32x64xf32>
    %cst_15 = arith.constant 0.000000e+00 : f32
    %15 = vector.broadcast %cst_15 : f32 to vector<32x64xf32>
    %16 = arith.maximumf %14, %15 : vector<32x64xf32>
    %cst_16 = arith.constant dense<0.000000e+00> : vector<32x1xf32>
    %17 = tpu.matmul %16, %5, %cst_16 {dimension_numbers = #tpu.dot_dimension_numbers<[1], [0], [0], [1], [0, 0, 1, 1], [], []>} : vector<32x64xf32>, vector<64x1xf32>, vector<32x1xf32> -> vector<32x1xf32>
    %18 = vector.broadcast %6 : f32 to vector<32x1xf32>
    %19 = arith.addf %17, %18 : vector<32x1xf32>
    %c0_17 = arith.constant 0 : index
    %c0_18 = arith.constant 0 : index
    %20 = vector.load %arg8[%c0_17, %c0_18] : memref<32x1xf32, #tpu.memory_space<vmem>>, vector<32x1xf32>
    tpu.vector_store %arg8[%c0_17, %c0_18], %19 {strides = array<i32>} : memref<32x1xf32, #tpu.memory_space<vmem>>, vector<32x1xf32>,
    return
  }
  func.func @transform_0(%arg0: i32) -> (i32, i32) {
    %c0_i32 = arith.constant 0 : i32
    %c0_i32_0 = arith.constant 0 : i32
    return %arg0, %c0_i32 : i32, i32
  }
  func.func @transform_1(%arg0: i32) -> (i32, i32) {
    %c0_i32 = arith.constant 0 : i32
    %c0_i32_0 = arith.constant 0 : i32
    %c0_i32_1 = arith.constant 0 : i32
    return %c0_i32, %c0_i32_0 : i32, i32
  }
  func.func @transform_2(%arg0: i32) -> (i32, i32) {
    %c0_i32 = arith.constant 0 : i32
    %c0_i32_0 = arith.constant 0 : i32
    %c0_i32_1 = arith.constant 0 : i32
    return %c0_i32, %c0_i32_0 : i32, i32
  }
  func.func @transform_3(%arg0: i32) -> (i32, i32) {
    %c0_i32 = arith.constant 0 : i32
    %c0_i32_0 = arith.constant 0 : i32
    %c0_i32_1 = arith.constant 0 : i32
    return %c0_i32, %c0_i32_0 : i32, i32
  }
  func.func @transform_4(%arg0: i32) -> (i32, i32) {
    %c0_i32 = arith.constant 0 : i32
    %c0_i32_0 = arith.constant 0 : i32
    %c0_i32_1 = arith.constant 0 : i32
    return %c0_i32, %c0_i32_0 : i32, i32
  }
  func.func @transform_5(%arg0: i32) -> (i32, i32) {
    %c0_i32 = arith.constant 0 : i32
    %c0_i32_0 = arith.constant 0 : i32
    %c0_i32_1 = arith.constant 0 : i32
    return %c0_i32, %c0_i32_0 : i32, i32
  }
  func.func @transform_6(%arg0: i32) -> (i32, i32) {
    %c0_i32 = arith.constant 0 : i32
    %c0_i32_0 = arith.constant 0 : i32
    %c0_i32_1 = arith.constant 0 : i32
    return %c0_i32, %c0_i32_0 : i32, i32
  }
  func.func @transform_7(%arg0: i32) -> (i32, i32) {
    %c0_i32 = arith.constant 0 : i32
    %c0_i32_0 = arith.constant 0 : i32
    return %arg0, %c0_i32 : i32, i32
  }
}

</mosaic_0001>

<bundles_post_ra>
// kernel: tpu_custom_call.1
= control target key start
LH: loop header
LB: loop body
LE: loop exit
PB: predicated region body
PF: predicated region fallthrough
CT: control target
= control target key end

     0   :  { %13 = vsyncpa [#allocation4], 0  ;;  %s454_s0 = inlined_call_operand.hbm [shape: f32[32,32], index: 0, kind: input, shape index: {}]   ;;  %s455_s1 = inlined_call_operand.hbm [shape: f32[32,64], index: 1, kind: input, shape index: {}]   ;;  %s456_s2 = inlined_call_operand.vmem [shape: f32[1,64], index: 2, kind: input, shape index: {}]   ;;  %s457_s3 = inlined_call_operand.vmem [shape: f32[64,64], index: 3, kind: input, shape index: {}]   ;;  %s458_s4 = inlined_call_operand.vmem [shape: f32[1,64], index: 4, kind: input, shape index: {}]   ;;  %s459_s5 = inlined_call_operand.vmem [shape: f32[64,1], index: 5, kind: input, shape index: {}]   ;;  %s460_s6 = inlined_call_operand.<no memory space> [shape: f32[1,1], index: 6, kind: input, shape index: {}]   ;;  %s461_s7 = inlined_call_operand.vmem [shape: f32[32,1], index: 7, kind: output, shape index: {}]  }
   0x1   :  { %s19_s26 = sshll.u32 %s454_s0, 4  ;;  %s20_s26 = int_to_ptr.hbm [resolvable:$true] %s19_s26 }
   0x2   :  { %14 = vsyncpa [#allocation6], 0  ;;  %s323_s27 = smov [#allocation3]   ;;  %s32_s8 = sshll.u32 %s455_s1, 4  ;;  %s33_s8 = int_to_ptr.hbm [resolvable:$true] %s32_s8 }
   0x3   :  { %s21_s28 = sshll.u32 %s323_s27, 4  ;;  %s324_s9 = smov 128   ;;  %s22_s28 = int_to_ptr.vmem [resolvable:$true] %s21_s28 }
   0x4   :  { %s325_s10 = smov 8   ;;  %s326_s11 = smov [#allocation5]  }
   0x5   :  { %27 = dma.hbm_to_vmem [thread:$0]  %s20_s26, 512, %s22_s28, [#allocation4], %s324_s9, %s324_s9, %s325_s10  }
   0x6   :  { %s34_s12 = sshll.u32 %s326_s11, 4  ;;  %s35_s12 = int_to_ptr.vmem [resolvable:$true] %s34_s12 }
   0x7   :  { %40 = dma.hbm_to_vmem [thread:$0]  %s33_s8, 512, %s35_s12, [#allocation6], %s324_s9, %s324_s9, %s325_s10  }
   0x8   :  { %319 = dma.done.wait [#allocation4], 512  }
   0x9   :  { %320 = vsyncadd [#allocation4], 4294966784 }
   0xa   :  { %321 = dma.done.wait [#allocation6], 512  }
   0xb   :  { %322 = vsyncadd [#allocation6], 4294966784  ;;  %v66_v0 = vld [vmem:[#allocation5 + $0x18] sm:$0xff]  ;;  %v65_v1 = vld [vmem:[#allocation5 + $0x10] sm:$0xff]  ;;  %vm89_vm0 = vcmask 261120   ;;  %vm138_vm1 = vcmask 523264   ;;  %v184_v50 = vstv %s460_s6 }
   0xc   :  { %114 = vmatpush.msra.mxu0 %v66_v0  ;;  %v64_v2 = vld [vmem:[#allocation5 + $0x8] sm:$0xff]  ;;  %v75_v3 = vld [vmem:[%s457_s3 + $0x38] sm:$0xff]  ;;  %v74_v4 = vld [vmem:[%s457_s3 + $0x30] sm:$0xff]  ;;  %vm226_vm2 = vcmask 7168  }
   0xd   :  { %159 = vmatpush.msra.mxu1 %v75_v3  ;;  %v63_v5 = vld [vmem:[#allocation5] sm:$0xff]  ;;  %v73_v6 = vld [vmem:[%s457_s3 + $0x28] sm:$0xff]  ;;  %249 = vmatpush.msra.mxu3 %v75_v3  ;;  %v71_v9 = vld [vmem:[%s457_s3 + $0x18] sm:$0xff] }
   0xe   :  { %115 = vmatpush.msra.mxu0 %v65_v1  ;;  %v59_v7 = vld [vmem:[#allocation3] sm:$0xff]  ;;  %v60_v10 = vld [vmem:[#allocation3 + $0x8] sm:$0xff]  ;;  %v61_v11 = vld [vmem:[#allocation3 + $0x10] sm:$0xff] }
   0xf   :  { %160 = vmatpush.msra.mxu1 %v74_v4  ;;  %v72_v8 = vld [vmem:[%s457_s3 + $0x20] sm:$0xff]  ;;  %250 = vmatpush.msra.mxu3 %v74_v4  ;;  %v62_v12 = vld [vmem:[#allocation3 + $0x18] sm:$0xff]  ;;  %v70_v13 = vld [vmem:[%s457_s3 + $0x10] sm:$0xff] }
  0x10   :  { %116 = vmatpush.msra.mxu0 %v64_v2  ;;  %v69_v14 = vld [vmem:[%s457_s3 + $0x8] sm:$0xff]  ;;  %v68_v15 = vld [vmem:[%s457_s3] sm:$0xff]  ;;  %v84_v17 = vld [vmem:[%s459_s5 + $0x38] sm:$0xff] }
  0x11   :  { %161 = vmatpush.msra.mxu1 %v73_v6  ;;  %251 = vmatpush.msra.mxu3 %v73_v6  ;;  %v269_v16 = vld [vmem:[%s456_s2] ss:$0 sm:$0xff]  ;;  %v83_v18 = vld [vmem:[%s459_s5 + $0x30] sm:$0xff]  ;;  %v82_v19 = vld [vmem:[%s459_s5 + $0x28] sm:$0xff] }
  0x12   :  { %117 = vmatpush.msra.mxu0 %v63_v5  ;;  %257 = vmatpush.msra.mxu2 %v84_v17  ;;  %v81_v22 = vld [vmem:[%s459_s5 + $0x20] sm:$0xff]  ;;  %v80_v24 = vld [vmem:[%s459_s5 + $0x18] sm:$0xff]  ;;  %v79_v34 = vld [vmem:[%s459_s5 + $0x10] sm:$0xff] }
  0x13   :  { %237 = vmatmul.msk.f32.vlgmr.msra.gmra.mxu0 %vm89_vm0, %v59_v7  ;;  %162 = vmatpush.msra.mxu1 %v72_v8  ;;  %v78_v35 = vld [vmem:[%s459_s5 + $0x8] sm:$0xff]  ;;  %v77_v36 = vld [vmem:[%s459_s5] sm:$0xff] }
  0x14   :  { %252 = vmatpush.msra.mxu3 %v72_v8  ;;  %258 = vmatpush.msra.mxu2 %v83_v18  ;;  %v270_v37 = vld [vmem:[%s458_s4] ss:$0 sm:$0xff] }
  0x15   :  { %163 = vmatpush.msra.mxu1 %v71_v9 }
  0x16   :  { %253 = vmatpush.msra.mxu3 %v71_v9  ;;  %259 = vmatpush.msra.mxu2 %v82_v19 }
  0x17   :  { %164 = vmatpush.msra.mxu1 %v70_v13 }
  0x18   :  { %254 = vmatpush.msra.mxu3 %v70_v13  ;;  %260 = vmatpush.msra.mxu2 %v81_v22 }
  0x19   :  { %165 = vmatpush.msra.mxu1 %v69_v14 }
  0x1a   :  { %255 = vmatpush.msra.mxu3 %v69_v14  ;;  %261 = vmatpush.msra.mxu2 %v80_v24 }
  0x1b   :  { %238 = vmatmul.msk.f32.gmra.mxu0 %vm89_vm0, %v60_v10  ;;  %166 = vmatpush.msra.mxu1 %v68_v15 }
  0x1c   :  { %256 = vmatpush.msra.mxu3 %v68_v15  ;;  %262 = vmatpush.msra.mxu2 %v79_v34 }
  0x1d   :  { %205 = vmatpush.msrb.mxu1 %v84_v17 }
  0x1e   :  { %263 = vmatpush.msra.mxu2 %v78_v35 }
  0x1f   :  { %206 = vmatpush.msrb.mxu1 %v83_v18 }
  0x20   :  { %264 = vmatpush.msra.mxu2 %v77_v36 }
  0x21   :  { %207 = vmatpush.msrb.mxu1 %v82_v19 }
  0x23   :  { %239 = vmatmul.msk.f32.gmra.mxu0 %vm89_vm0, %v61_v11  ;;  %208 = vmatpush.msrb.mxu1 %v81_v22 }
  0x25   :  { %209 = vmatpush.msrb.mxu1 %v80_v24 }
  0x27   :  { %210 = vmatpush.msrb.mxu1 %v79_v34 }
  0x29   :  { %211 = vmatpush.msrb.mxu1 %v78_v35 }
  0x2b   :  { %240 = vmatmul.msk.f32.gmra.mxu0 %vm89_vm0, %v62_v12  ;;  %212 = vmatpush.msrb.mxu1 %v77_v36 }
  0x90   :  { %v119_v20 = vpop.f32.mrf.mxu0 }
  0x91   :  { %v120_v21 = vadd.f32 %v269_v16, %v119_v20 }
  0x93   :  { %v131_v23 = vmax.f32 %v120_v21, 0.0 }
  0x95   :  { %241 = vmatmul.msk.f32.vlgmr.msra.gmra.mxu1 %vm138_vm1, %v131_v23 }
  0x98   :  { %v122_v25 = vpop.f32.mrf.mxu0 }
  0x99   :  { %v123_v26 = vadd.f32 %v269_v16, %v122_v25 }
  0x9b   :  { %v132_v27 = vmax.f32 %v123_v26, 0.0 }
  0x9d   :  { %242 = vmatmul.msk.f32.vlgmr.msra.gmra.mxu3 %vm138_vm1, %v132_v27 }
  0xa0   :  { %v125_v28 = vpop.f32.mrf.mxu0 }
  0xa1   :  { %v126_v29 = vadd.f32 %v269_v16, %v125_v28 }
  0xa3   :  { %v133_v30 = vmax.f32 %v126_v29, 0.0 }
  0xa5   :  { %243 = vmatmul.msk.f32.gmra.mxu3 %vm138_vm1, %v133_v30 }
  0xa8   :  { %v128_v31 = vpop.f32.mrf.mxu0 }
  0xa9   :  { %v129_v32 = vadd.f32 %v269_v16, %v128_v31 }
  0xab   :  { %v134_v33 = vmax.f32 %v129_v32, 0.0 }
  0xad   :  { %244 = vmatmul.msk.f32.gmra.mxu3 %vm138_vm1, %v134_v33 }
 0x112   :  { %v168_v38 = vpop.f32.mrf.mxu1 }
 0x113   :  { %v169_v39 = vadd.f32 %v270_v37, %v168_v38 }
 0x115   :  { %v180_v40 = vmax.f32 %v169_v39, 0.0 }
 0x117   :  { %245 = vmatmul.msk.f32.vlgmr.msrb.gmra.mxu1 %vm138_vm1, %v180_v40 }
 0x120   :  { %v171_v41 = vpop.f32.mrf.mxu3 }
 0x121   :  { %v172_v42 = vadd.f32 %v270_v37, %v171_v41 }
 0x123   :  { %v181_v43 = vmax.f32 %v172_v42, 0.0 }
 0x125   :  { %246 = vmatmul.msk.f32.vlgmr.msra.gmra.mxu2 %vm138_vm1, %v181_v43 }
 0x128   :  { %v174_v44 = vpop.f32.mrf.mxu3 }
 0x129   :  { %v175_v45 = vadd.f32 %v270_v37, %v174_v44 }
 0x12b   :  { %v182_v46 = vmax.f32 %v175_v45, 0.0 }
 0x12d   :  { %247 = vmatmul.msk.f32.gmra.mxu2 %vm138_vm1, %v182_v46 }
 0x130   :  { %v177_v47 = vpop.f32.mrf.mxu3 }
 0x131   :  { %v178_v48 = vadd.f32 %v270_v37, %v177_v47 }
 0x133   :  { %v183_v49 = vmax.f32 %v178_v48, 0.0 }
 0x135   :  { %248 = vmatmul.msk.f32.gmra.mxu2 %vm138_vm1, %v183_v49 }
 0x194   :  { %v214_v51 = vpop.f32.mrf.mxu1 }
 0x195   :  { %v215_v52 = vadd.f32 %v214_v51, %v184_v50 }
 0x197   :  { %227 = vst.msk [vmem:[%s461_s7] sm:$0xff] %vm226_vm2, %v215_v52 }
 0x1a8   :  { %v217_v53 = vpop.f32.mrf.mxu2 }
 0x1a9   :  { %v218_v54 = vadd.f32 %v217_v53, %v184_v50 }
 0x1ab   :  { %228 = vst.msk [vmem:[%s461_s7 + $0x8] sm:$0xff] %vm226_vm2, %v218_v54 }
 0x1b0   :  { %v220_v55 = vpop.f32.mrf.mxu2 }
 0x1b1   :  { %v221_v56 = vadd.f32 %v220_v55, %v184_v50 }
 0x1b3   :  { %229 = vst.msk [vmem:[%s461_s7 + $0x10] sm:$0xff] %vm226_vm2, %v221_v56 }
 0x1b8   :  { %v223_v57 = vpop.f32.mrf.mxu2 }
 0x1b9   :  { %v224_v58 = vadd.f32 %v223_v57, %v184_v50 }
 0x1bb   :  { %230 = vst.msk [vmem:[%s461_s7 + $0x18] sm:$0xff] %vm226_vm2, %v224_v58 }
 0x1bc   :  { %235 = vsyncpa [#allocation4], 1 }
 0x1bd   :  { %236 = vsyncpa [#allocation6], 1 }

</bundles_post_ra>
